<compile_context>
chip_gen: v6e
topology: v6e:2x2x1
jax: 0.10.0
libtpu: 0.0.40
codegen_flags: <defaults>
</compile_context>

<pallas_src>
import functools

import jax
import jax.numpy as jnp
from jax import lax
from jax.experimental import pallas as pl
from jax.experimental.pallas import tpu as pltpu

NEG_INF = -1e30  # plain Python float: must NOT be a captured jnp constant


def _round_up(x: int, m: int) -> int:
    return ((x + m - 1) // m) * m


def _sublane_packing(dtype) -> int:
    # f32 -> 8, bf16 -> 16, int8/fp8 -> 32 sublanes per packed (x, 128) tile.
    return max(8, 32 // jnp.dtype(dtype).itemsize)


def _pair_softmax_contrast_loss_kernel(
    x_ref,     # (blk, D) row block of pre-normalized, 1/T-scaled text embeddings
    y_ref,     # (blk, D) column block of pre-normalized positive embeddings
    o_ref,     # (blk, 1) per-row loss output (f32)
    m_ref,     # (blk, 1) scratch: running max (f32)
    l_ref,     # (blk, 1) scratch: running sum of exp (f32)
    diag_ref,  # (blk, 1) scratch: sim[r, r] for this row block (f32)
    *,
    batch: int,
    block: int,
):
    i = pl.program_id(0)
    j = pl.program_id(1)
    n_j = pl.num_programs(1)
    needs_mask = (batch % block) != 0  # static (Python): padded columns exist?

    # ---- per-row-block init (first column block) -------------------------
    @pl.when(j == 0)
    def _init():
        m_ref[...] = jnp.full_like(m_ref, NEG_INF)
        l_ref[...] = jnp.zeros_like(l_ref)
        diag_ref[...] = jnp.zeros_like(diag_ref)

    # ---- (blk, blk) similarity tile on the MXU (contract last dims) ------
    sim = lax.dot_general(
        x_ref[...], y_ref[...],
        dimension_numbers=(((1,), (1,)), ((), ())),
        preferred_element_type=jnp.float32,
    )

    # ---- online softmax update -------------------------------------------
    def _softmax_update(s):
        m_prev = m_ref[...]
        m_new = jnp.maximum(m_prev, jnp.max(s, axis=-1, keepdims=True))
        alpha = jnp.exp(m_prev - m_new)
        p = jnp.exp(s - m_new)
        l_ref[...] = alpha * l_ref[...] + jnp.sum(p, axis=-1, keepdims=True)
        m_ref[...] = m_new

    if needs_mask:
        # Only the last column block contains padded columns; every other
        # block takes the unmasked fast path (no iota / compare / select).
        @pl.when(j == n_j - 1)
        def _update_masked():
            col = j * block + lax.broadcasted_iota(jnp.int32, (1, block), 1)
            _softmax_update(jnp.where(col < batch, sim, NEG_INF))

        @pl.when(j != n_j - 1)
        def _update():
            _softmax_update(sim)
    else:
        _softmax_update(sim)

    # ---- diagonal: sim[r, r] read off the i == j tile ----------------------
    @pl.when(j == i)
    def _diag():
        r = lax.broadcasted_iota(jnp.int32, (block, 1), 0)
        c = lax.broadcasted_iota(jnp.int32, (1, block), 1)
        diag_ref[...] = jnp.sum(
            jnp.where(r == c, sim, 0.0), axis=-1, keepdims=True)

    # ---- finalize after the last column block -----------------------------
    @pl.when(j == n_j - 1)
    def _finalize():
        per_row = m_ref[...] + jnp.log(l_ref[...]) - diag_ref[...]
        if needs_mask:
            row = i * block + lax.broadcasted_iota(jnp.int32, (block, 1), 0)
            per_row = jnp.where(row < batch, per_row, 0.0)
        o_ref[...] = per_row


def _l2_normalize(v: jax.Array, scale: float) -> jax.Array:
    v32 = v.astype(jnp.float32)
    sq = jnp.sum(v32 * v32, axis=-1, keepdims=True)
    inv = lax.rsqrt(jnp.maximum(sq, 1e-16))  # per-row clamp (see header note)
    return v32 * (inv * scale)


def pair_softmax_contrast_loss(
    text_embeddings: jax.Array,
    text_pos_embeddings: jax.Array,
    temperature: float = 0.05,
    block_size: int | None = None,
    mxu_dtype=None,
) -> jax.Array:
    B, D = text_embeddings.shape
    assert text_pos_embeddings.shape == (B, D)

    # MXU / HBM-streaming dtype.  For f32 inputs pass jnp.bfloat16 to halve
    # the y re-stream traffic and use the native bf16 MXU path; softmax math
    # stays f32 either way.
    if mxu_dtype is None:
        mxu_dtype = text_embeddings.dtype
    itemsize = jnp.dtype(mxu_dtype).itemsize
    pack = _sublane_packing(mxu_dtype)

    # Square tiles so the diagonal of row block i lives in column block i.
    # TODO(synk): on v7x (2 TensorCores) with B <= block_size, pass
    # block_size ~ round_up(B // 2, pack) so the "parallel" row axis has >= 2
    # blocks and both cores get work.
    if block_size is None:
        block_size = min(512, _round_up(B, pack))
    assert block_size % pack == 0, (
        f"block_size must be a multiple of {pack} for {jnp.dtype(mxu_dtype).name}")
    blk = block_size
    B_pad = _round_up(B, blk)

    # Hoisted pre-normalization: one streaming pass over each embedding
    # matrix; 1/temperature is folded into the x rows.  The kernel's inner
    # loop is then pure MXU matmul + online softmax.
    x = _l2_normalize(text_embeddings, 1.0 / temperature).astype(mxu_dtype)
    y = _l2_normalize(text_pos_embeddings, 1.0).astype(mxu_dtype)

    if B_pad != B:
        pad = B_pad - B
        x = jnp.pad(x, ((0, pad), (0, 0)))
        y = jnp.pad(y, ((0, pad), (0, 0)))

    n_i = B_pad // blk
    n_j = B_pad // blk

    kernel = functools.partial(
        _pair_softmax_contrast_loss_kernel, batch=B, block=blk)

    # Live VMEM ~ double-buffered x + y tiles, plus the (blk, blk) f32 sim
    # working set and tiny (blk, 1) scratches; leave headroom.
    tile_bytes = blk * D * itemsize
    vmem_needed = 4 * tile_bytes + 2 * blk * blk * 4 + 16 * blk
    vmem_limit = int(min(128 * 1024 * 1024,
                         max(32 * 1024 * 1024, int(vmem_needed * 1.5))))

    per_row = pl.pallas_call(
        kernel,
        out_shape=jax.ShapeDtypeStruct((B_pad, 1), jnp.float32),
        grid_spec=pltpu.PrefetchScalarGridSpec(
            num_scalar_prefetch=0,
            grid=(n_i, n_j),
            in_specs=[
                pl.BlockSpec((blk, D), lambda i, j: (i, 0)),   # x row block
                pl.BlockSpec((blk, D), lambda i, j: (j, 0)),   # y col block
            ],
            out_specs=pl.BlockSpec((blk, 1), lambda i, j: (i, 0)),
            scratch_shapes=[
                pltpu.VMEM((blk, 1), jnp.float32),   # running max
                pltpu.VMEM((blk, 1), jnp.float32),   # running sum of exp
                pltpu.VMEM((blk, 1), jnp.float32),   # diagonal sim
            ],
        ),
        compiler_params=pltpu.CompilerParams(
            dimension_semantics=("parallel", "arbitrary"),
            vmem_limit_bytes=vmem_limit,
        ),
        cost_estimate=pl.CostEstimate(
            flops=2 * B_pad * B_pad * D,
            transcendentals=B_pad * B_pad + 2 * B_pad,
            bytes_accessed=(B_pad * D + n_i * B_pad * D) * itemsize + B_pad * 4,
        ),
    )(x, y)

    # Tiny final reduction (B scalars); padded rows are already zero.
    return jnp.sum(per_row) / B


def _reference_loss(x, y, temperature=0.05):
    x = x.astype(jnp.float32)
    y = y.astype(jnp.float32)
    xn = jnp.linalg.norm(x, axis=-1, keepdims=True)
    yn = jnp.linalg.norm(y, axis=-1, keepdims=True)
    dots = jnp.dot(x, y.T, precision=lax.Precision.HIGHEST)
    sim = dots / jnp.maximum(xn * yn.T, 1e-8) / temperature
    logp = jax.nn.log_softmax(sim, axis=-1)
    return -jnp.mean(jnp.diagonal(logp))


if __name__ == "__main__":
    key = jax.random.PRNGKey(0)
    k1, k2, k3, k4, k5, k6 = jax.random.split(key, 6)

    # 1) Small shape consistent with the module's pairwise-batch forward.
    B, D = 8, 32
    text_emb = jax.random.normal(k1, (B, D), dtype=jnp.float32)
    text_pos_emb = jax.random.normal(k2, (B, D), dtype=jnp.float32)
    loss = pair_softmax_contrast_loss(text_emb, text_pos_emb, temperature=0.05)
    jax.block_until_ready(loss)
    ref = _reference_loss(text_emb, text_pos_emb, temperature=0.05)
    assert jnp.allclose(loss, ref, rtol=1e-4, atol=1e-4), (loss, ref)

    # 2) Exercise the tiled / online-softmax / padding path: B=20 with 8-row
    #    blocks -> 3x3 grid, 4 padded rows/cols masked out of lse and the mean.
    B2, D2 = 20, 32
    x2 = jax.random.normal(k3, (B2, D2), dtype=jnp.float32)
    y2 = jax.random.normal(k4, (B2, D2), dtype=jnp.float32)
    loss2 = pair_softmax_contrast_loss(x2, y2, temperature=0.05, block_size=8)
    jax.block_until_ready(loss2)
    ref2 = _reference_loss(x2, y2, temperature=0.05)
    assert jnp.allclose(loss2, ref2, rtol=1e-4, atol=1e-4), (loss2, ref2)

    # 3) Exercise the bf16 MXU-operand perf path (f32 inputs, bf16 operands);
    #    looser tolerance vs the f32 reference because the products are bf16.
    B3, D3 = 16, 64
    x3 = jax.random.normal(k5, (B3, D3), dtype=jnp.float32)
    y3 = jax.random.normal(k6, (B3, D3), dtype=jnp.float32)
    loss3 = pair_softmax_contrast_loss(
        x3, y3, temperature=0.05, mxu_dtype=jnp.bfloat16)
    jax.block_until_ready(loss3)
    ref3 = _reference_loss(x3, y3, temperature=0.05)
    assert jnp.allclose(loss3, ref3, rtol=3e-2, atol=1e-1), (loss3, ref3)

    print("KERNEL_OK")
</pallas_src>

<mosaic_0001>
module attributes {stable_mosaic.version = 11 : i64} {
  func.func @_pair_softmax_contrast_loss_kernel(%arg0: i32, %arg1: i32, %arg2: memref<8x32xf32, #tpu.memory_space<vmem>>, %arg3: memref<8x32xf32, #tpu.memory_space<vmem>>, %arg4: memref<8x1xf32, #tpu.memory_space<vmem>>, %arg5: memref<8x1xf32, #tpu.memory_space<vmem>>, %arg6: memref<8x1xf32, #tpu.memory_space<vmem>>, %arg7: memref<8x1xf32, #tpu.memory_space<vmem>>) attributes {dimension_semantics = [#tpu.dimension_semantics<parallel>, #tpu.dimension_semantics<arbitrary>], iteration_bounds = array<i64: 1, 1>, scalar_prefetch = 0 : i64, scratch_operands = 3 : i64, tpu.core_type = #tpu.core_type<tc>, window_params = [{transform_indices = @transform_0, window_bounds = array<i64: 8, 32>}, {transform_indices = @transform_1, window_bounds = array<i64: 8, 32>}, {transform_indices = @transform_2, window_bounds = array<i64: 8, 1>}]} {
    %c0_i32 = arith.constant 0 : i32
    %0 = arith.cmpi eq, %arg1, %c0_i32 : i32
    %1 = arith.extui %0 : i1 to i32
    %c0_i32_0 = arith.constant 0 : i32
    %2 = arith.cmpi ne, %1, %c0_i32_0 : i32
    scf.if %2 {
      %cst_17 = arith.constant -1.000000e+30 : f32
      %28 = vector.broadcast %cst_17 : f32 to vector<8x1xf32>
      %c0_18 = arith.constant 0 : index
      %c0_19 = arith.constant 0 : index
      %29 = vector.load %arg5[%c0_18, %c0_19] : memref<8x1xf32, #tpu.memory_space<vmem>>, vector<8x1xf32>
      tpu.vector_store %arg5[%c0_18, %c0_19], %28 {strides = array<i32>} : memref<8x1xf32, #tpu.memory_space<vmem>>, vector<8x1xf32>,
      %cst_20 = arith.constant 0.000000e+00 : f32
      %30 = vector.broadcast %cst_20 : f32 to vector<8x1xf32>
      %c0_21 = arith.constant 0 : index
      %c0_22 = arith.constant 0 : index
      %31 = vector.load %arg6[%c0_21, %c0_22] : memref<8x1xf32, #tpu.memory_space<vmem>>, vector<8x1xf32>
      tpu.vector_store %arg6[%c0_21, %c0_22], %30 {strides = array<i32>} : memref<8x1xf32, #tpu.memory_space<vmem>>, vector<8x1xf32>,
      %cst_23 = arith.constant 0.000000e+00 : f32
      %32 = vector.broadcast %cst_23 : f32 to vector<8x1xf32>
      %c0_24 = arith.constant 0 : index
      %c0_25 = arith.constant 0 : index
      %33 = vector.load %arg7[%c0_24, %c0_25] : memref<8x1xf32, #tpu.memory_space<vmem>>, vector<8x1xf32>
      tpu.vector_store %arg7[%c0_24, %c0_25], %32 {strides = array<i32>} : memref<8x1xf32, #tpu.memory_space<vmem>>, vector<8x1xf32>,
    } else {
    }
    %c0 = arith.constant 0 : index
    %c0_1 = arith.constant 0 : index
    %3 = vector.load %arg2[%c0, %c0_1] : memref<8x32xf32, #tpu.memory_space<vmem>>, vector<8x32xf32>
    %c0_2 = arith.constant 0 : index
    %c0_3 = arith.constant 0 : index
    %4 = vector.load %arg3[%c0_2, %c0_3] : memref<8x32xf32, #tpu.memory_space<vmem>>, vector<8x32xf32>
    %cst = arith.constant dense<0.000000e+00> : vector<8x8xf32>
    %5 = tpu.matmul %3, %4, %cst {dimension_numbers = #tpu.dot_dimension_numbers<[1], [1], [0], [0], [0, 0, 1, 0], [], []>} : vector<8x32xf32>, vector<8x32xf32>, vector<8x8xf32> -> vector<8x8xf32>
    %c0_4 = arith.constant 0 : index
    %c0_5 = arith.constant 0 : index
    %6 = vector.load %arg5[%c0_4, %c0_5] : memref<8x1xf32, #tpu.memory_space<vmem>>, vector<8x1xf32>
    %cst_6 = arith.constant dense<0xFF800000> : vector<8xf32>
    %7 = vector.multi_reduction <maximumf>, %5, %cst_6 [1] : vector<8x8xf32> to vector<8xf32>
    %8 = vector.shape_cast %7 : vector<8xf32> to vector<8x1xf32>
    %9 = arith.maximumf %6, %8 : vector<8x1xf32>
    %10 = arith.subf %6, %9 : vector<8x1xf32>
    %11 = math.exp %10 : vector<8x1xf32>
    %12 = vector.broadcast %9 : vector<8x1xf32> to vector<8x8xf32>
    %13 = arith.subf %5, %12 : vector<8x8xf32>
    %14 = math.exp %13 : vector<8x8xf32>
    %c0_7 = arith.constant 0 : index
    %c0_8 = arith.constant 0 : index
    %15 = vector.load %arg6[%c0_7, %c0_8] : memref<8x1xf32, #tpu.memory_space<vmem>>, vector<8x1xf32>
    %16 = arith.mulf %11, %15 : vector<8x1xf32>
    %cst_9 = arith.constant dense<0.000000e+00> : vector<8xf32>
    %17 = vector.multi_reduction <add>, %14, %cst_9 [1] : vector<8x8xf32> to vector<8xf32>
    %18 = vector.shape_cast %17 : vector<8xf32> to vector<8x1xf32>
    %19 = arith.addf %16, %18 : vector<8x1xf32>
    %c0_10 = arith.constant 0 : index
    %c0_11 = arith.constant 0 : index
    %20 = vector.load %arg6[%c0_10, %c0_11] : memref<8x1xf32, #tpu.memory_space<vmem>>, vector<8x1xf32>
    tpu.vector_store %arg6[%c0_10, %c0_11], %19 {strides = array<i32>} : memref<8x1xf32, #tpu.memory_space<vmem>>, vector<8x1xf32>,
    %c0_12 = arith.constant 0 : index
    %c0_13 = arith.constant 0 : index
    %21 = vector.load %arg5[%c0_12, %c0_13] : memref<8x1xf32, #tpu.memory_space<vmem>>, vector<8x1xf32>
    tpu.vector_store %arg5[%c0_12, %c0_13], %9 {strides = array<i32>} : memref<8x1xf32, #tpu.memory_space<vmem>>, vector<8x1xf32>,
    %22 = arith.cmpi eq, %arg1, %arg0 : i32
    %23 = arith.extui %22 : i1 to i32
    %c0_i32_14 = arith.constant 0 : i32
    %24 = arith.cmpi ne, %23, %c0_i32_14 : i32
    scf.if %24 {
      %28 = tpu.iota {dimensions = array<i32: 0>} : vector<8x1xi32>
      %29 = tpu.iota {dimensions = array<i32: 1>} : vector<1x8xi32>
      %30 = vector.broadcast %28 : vector<8x1xi32> to vector<8x8xi32>
      %31 = vector.broadcast %29 : vector<1x8xi32> to vector<8x8xi32>
      %32 = arith.cmpi eq, %30, %31 : vector<8x8xi32>
      %cst_17 = arith.constant 0.000000e+00 : f32
      %33 = vector.broadcast %cst_17 : f32 to vector<8x8xf32>
      %34 = arith.select %32, %5, %33 : vector<8x8xi1>, vector<8x8xf32>
      %cst_18 = arith.constant dense<0.000000e+00> : vector<8xf32>
      %35 = vector.multi_reduction <add>, %34, %cst_18 [1] : vector<8x8xf32> to vector<8xf32>
      %36 = vector.shape_cast %35 : vector<8xf32> to vector<8x1xf32>
      %c0_19 = arith.constant 0 : index
      %c0_20 = arith.constant 0 : index
      %37 = vector.load %arg7[%c0_19, %c0_20] : memref<8x1xf32, #tpu.memory_space<vmem>>, vector<8x1xf32>
      tpu.vector_store %arg7[%c0_19, %c0_20], %36 {strides = array<i32>} : memref<8x1xf32, #tpu.memory_space<vmem>>, vector<8x1xf32>,
    } else {
    }
    %c0_i32_15 = arith.constant 0 : i32
    %25 = arith.cmpi eq, %arg1, %c0_i32_15 : i32
    %26 = arith.extui %25 : i1 to i32
    %c0_i32_16 = arith.constant 0 : i32
    %27 = arith.cmpi ne, %26, %c0_i32_16 : i32
    scf.if %27 {
      %c0_17 = arith.constant 0 : index
      %c0_18 = arith.constant 0 : index
      %28 = vector.load %arg5[%c0_17, %c0_18] : memref<8x1xf32, #tpu.memory_space<vmem>>, vector<8x1xf32>
      %c0_19 = arith.constant 0 : index
      %c0_20 = arith.constant 0 : index
      %29 = vector.load %arg6[%c0_19, %c0_20] : memref<8x1xf32, #tpu.memory_space<vmem>>, vector<8x1xf32>
      %30 = math.log %29 : vector<8x1xf32>
      %31 = arith.addf %28, %30 : vector<8x1xf32>
      %c0_21 = arith.constant 0 : index
      %c0_22 = arith.constant 0 : index
      %32 = vector.load %arg7[%c0_21, %c0_22] : memref<8x1xf32, #tpu.memory_space<vmem>>, vector<8x1xf32>
      %33 = arith.subf %31, %32 : vector<8x1xf32>
      %c0_23 = arith.constant 0 : index
      %c0_24 = arith.constant 0 : index
      %34 = vector.load %arg4[%c0_23, %c0_24] : memref<8x1xf32, #tpu.memory_space<vmem>>, vector<8x1xf32>
      tpu.vector_store %arg4[%c0_23, %c0_24], %33 {strides = array<i32>} : memref<8x1xf32, #tpu.memory_space<vmem>>, vector<8x1xf32>,
    } else {
    }
    return
  }
  func.func @transform_0(%arg0: i32, %arg1: i32) -> (i32, i32) {
    %c0_i32 = arith.constant 0 : i32
    %c0_i32_0 = arith.constant 0 : i32
    return %arg0, %c0_i32 : i32, i32
  }
  func.func @transform_1(%arg0: i32, %arg1: i32) -> (i32, i32) {
    %c0_i32 = arith.constant 0 : i32
    %c0_i32_0 = arith.constant 0 : i32
    return %arg1, %c0_i32 : i32, i32
  }
  func.func @transform_2(%arg0: i32, %arg1: i32) -> (i32, i32) {
    %c0_i32 = arith.constant 0 : i32
    %c0_i32_0 = arith.constant 0 : i32
    return %arg0, %c0_i32 : i32, i32
  }
}

</mosaic_0001>

<bundles_post_ra>
// kernel: tpu_custom_call.1
= control target key start
LH: loop header
LB: loop body
LE: loop exit
PB: predicated region body
PF: predicated region fallthrough
CT: control target
= control target key end

     0   :  { %7 = vsyncpa [#allocation6], 0  ;;  %s285_s0 = inlined_call_operand.hbm [shape: f32[8,32], index: 0, kind: input, shape index: {}]   ;;  %s286_s1 = inlined_call_operand.hbm [shape: f32[8,32], index: 1, kind: input, shape index: {}]   ;;  %s287_s2 = inlined_call_operand.vmem [shape: f32[8,1], index: 2, kind: output, shape index: {}]  }
   0x1   :  { %8 = vsyncpa [#allocation8], 0  ;;  %s245_s9 = smov [#allocation5]   ;;  %s246_s11 = smov [#allocation7]  }
   0x2   :  { %s15_s10 = sshll.u32 %s245_s9, 4  ;;  %s25_s12 = sshll.u32 %s246_s11, 4  ;;  %s16_s10 = int_to_ptr.vmem [resolvable:$true] %s15_s10  ;;  %s26_s12 = int_to_ptr.vmem [resolvable:$true] %s25_s12 }
   0x3   :  { %s209_s13 = scalar_lea.vmem %s16_s10, 128  ;;  %p214_p1 = scmp.lt.s32.totalorder %s16_s10, %s16_s10 }
   0x4   :  { %p210_p0 = scmp.ne.s32.totalorder %s16_s10, %s209_s13  ;;  %p215_p2 = scmp.lt.s32.totalorder %s209_s13, %s209_s13 }
   0x6   :  { %p216_p3 = por %p215_p2, %p214_p1 }
   0x8   :  { %p217_p4 = pnand %p216_p3, %p210_p0 }
   0xa   :  { %220 = shalt.err (!%p217_p4)
}
   0xb   :  { %18 = dma.hbm_to_vmem [thread:$0]  %s285_s0, 128, %s16_s10, [#allocation6]  }
   0xc   :  { %s229_s16 = scalar_lea.vmem %s26_s12, 128  ;;  %p234_p6 = scmp.lt.s32.totalorder %s26_s12, %s26_s12 }
   0xd   :  { %p230_p5 = scmp.ne.s32.totalorder %s26_s12, %s229_s16  ;;  %p235_p7 = scmp.lt.s32.totalorder %s229_s16, %s229_s16 }
   0xf   :  { %p236_p8 = por %p235_p7, %p234_p6 }
  0x11   :  { %p237_p9 = pnand %p236_p8, %p230_p5 }
  0x13   :  { %240 = shalt.err (!%p237_p9)
}
  0x14   :  { %28 = dma.hbm_to_vmem [thread:$0]  %s286_s1, 128, %s26_s12, [#allocation8]  }
  0x15   :  { %241 = dma.done.wait [#allocation6], 128  }
  0x16   :  { %242 = vsyncadd [#allocation6], 4294967168 }
  0x17   :  { %243 = dma.done.wait [#allocation8], 128  }
  0x18   :  { %244 = vsyncadd [#allocation8], 4294967168  ;;  %vm39_vm0 = vcmask 7168   ;;  %v247_v0 = vmov 0.0   ;;  %vm248_vm1 = vmmov 0   ;;  %vm45_vm2 = vcmask 261120  }
  0x19   :  { %41 = vst.msk [vmem:[#allocation3] sm:$0xff] %vm39_vm0, %v247_v0  ;;  %183 = vmatprep.subr.mxu0 %v247_v0  ;;  %42 = vst.msk [vmem:[#allocation4] sm:$0xff] %vm39_vm0, %v247_v0  ;;  %185 = vmatprep.mubr.msk.f32.mxu0 %vm248_vm1, %v247_v0  ;;  %v44_v1 = vld [vmem:[#allocation7] sm:$0xff]  ;;  %v43_v2 = vld [vmem:[#allocation5] sm:$0xff]  ;;  %v249_v3 = vmov -1e+30   ;;  %v152_v15 = vlaneseq }
  0x1a   :  { %184 = vmatpush3.xpose.msk.msra.mxu0 %vm45_vm2, %v44_v1  ;;  %40 = vst.msk [vmem:[#allocation2] sm:$0xff] %vm39_vm0, %v249_v3  ;;  %vm123_vm3 = vcmask 64512   ;;  %v250_v7 = vmov 0  }
  0x1b   :  { %194 = vset.pattern.permute.xlu0 %v250_v7  ;;  %v153_v16 = vshrl.u32 %v152_v15, 7  ;;  %v155_v17 = vand.u32 127, %v152_v15 }
  0x1d   :  { %186 = vmatmul.mubr.msk.f32.vlgmr.msra.gmra.mxu0 %vm45_vm2, %v43_v2  ;;  %vm156_vm4 = vcmp.eq.s32.totalorder %v153_v16, %v155_v17 }
  0x20   :  { %v139_v24 = vld [vmem:[#allocation3] sm:$0xff] }
  0x21   :  { %v122_v8 = vld [vmem:[#allocation2] sm:$0xff] }
  0xdd   :  { %v118_v4 = vpop.f32.mrf.mxu0 }
  0xde   :  { %v124_v5 = vsel %vm123_vm3, %v118_v4, -inf  ;;  %v157_v20 = vsel %vm156_vm4, %v118_v4, 0.0 }
  0xdf   :  { %125 = vmax.xlane.f32.xlu0 %v124_v5  ;;  %v187_v6 = vpop.f32.mrf.mxu0  ;;  %v158_v21 = vsel %vm123_vm3, %v157_v20, 0.0 }
 0x168   :  { %v126_v9 = vpop.xlane.xlu0 %125 }
 0x169   :  { %v127_v10 = vmax.f32 %v122_v8, %v126_v9 }
 0x16b   :  { %v128_v11 = vsub.f32 %v122_v8, %v127_v10  ;;  %147 = vst.msk [vmem:[#allocation2] sm:$0xff] %vm39_vm0, %v127_v10  ;;  %133 = vperm.xlu0 %194, %v127_v10  }
 0x16d   :  { %v129_v22 = vmul.f32 1.442695, %v128_v11 }
 0x172   :  { %v165_v32 = vld [vmem:[#allocation2] sm:$0xff] }
 0x1e6   :  { %v134_v12 = vpop.permute.xlu0 %133 }
 0x1e7   :  { %v136_v13 = vsub.f32 %v118_v4, %v134_v12 }
 0x1e9   :  { %v137_v14 = vmul.f32 1.442695, %v136_v13 }
 0x1eb   :  { %195 = vpow2.f32 %v137_v14 }
 0x1ec   :  { %197 = vpow2.f32 %v129_v22 }
 0x1f8   :  { %v196_v18 = vpop.eup %195 }
 0x1f9   :  { %v141_v19 = vsel %vm123_vm3, %v196_v18, 0.0  ;;  %v198_v23 = vpop.eup %197 }
 0x1fa   :  { %142 = vadd.xlane.f32.xlu1 %v141_v19  ;;  %v140_v25 = vmul.f32 %v198_v23, %v139_v24 }
 0x1fe   :  { %159 = vadd.xlane.f32.xlu1 %v158_v21 }
 0x283   :  { %v143_v26 = vpop.xlane.xlu1 %142 }
 0x284   :  { %v144_v27 = vadd.f32 %v143_v26, %v140_v25 }
 0x286   :  { %146 = vst.msk [vmem:[#allocation3] sm:$0xff] %vm39_vm0, %v144_v27 }
 0x287   :  { %v160_v28 = vpop.xlane.xlu1 %159 }
 0x288   :  { %161 = vst.msk [vmem:[#allocation4] sm:$0xff] %vm39_vm0, %v160_v28 }
 0x28d   :  { %v166_v29 = vld [vmem:[#allocation3] sm:$0xff] }
 0x28e   :  { %199 = vlog2.f32 %v166_v29 }
 0x28f   :  { %v170_v34 = vld [vmem:[#allocation4] sm:$0xff] }
 0x29b   :  { %v200_v30 = vpop.eup %199 }
 0x29c   :  { %v168_v31 = vmul.f32 0.6931472, %v200_v30 }
 0x29e   :  { %v169_v33 = vadd.f32 %v168_v31, %v165_v32 }
 0x2a0   :  { %v171_v35 = vsub.f32 %v169_v33, %v170_v34 }
 0x2a2   :  { %172 = vst.msk [vmem:[%s287_s2] sm:$0xff] %vm39_vm0, %v171_v35 }
 0x2a3   :  { %177 = vsyncpa [#allocation6], 1 }
 0x2a4   :  { %178 = vsyncpa [#allocation8], 1 }

</bundles_post_ra>
